<compile_context>
chip_gen: v6e
topology: v6e:2x2x1
jax: 0.10.0
libtpu: 0.0.40
codegen_flags: <defaults>
</compile_context>

<pallas_src>
import math
from functools import partial

import jax
import jax.numpy as jnp
import numpy as np
from jax import lax
from jax.experimental import pallas as pl
from jax.experimental.pallas import tpu as pltpu


# ----------------------------- Pallas kernel ------------------------------ #
def _conv_s2_gelu_kernel(ph_ref, w_ref, b_ref, o_ref, xk_ref, *,
                         cin, row_stride, out_len):
    """One (batch, row-tile) step of the fused stride-2 3x3 conv + bias + GELU.

    ph_ref : (4*cin, (th+1)*R + 1)  row tile of the 4 stride-2 phases, channel-major,
                                    spatial flattened with row stride R = Wo+1, plus
                                    one dummy element so every tap slice is in-bounds.
    w_ref  : (cout, 9*cin)          fused weight, column = (kh*3+kw)*cin + ci.
    b_ref  : (cout, 1)              f32 bias.
    o_ref  : (cout, out_len)        out_len = th*R; columns with wo == Wo are garbage
                                    and are stripped by the wrapper.
    xk_ref : (9*cin, out_len)       VMEM scratch: the 9 tap slices stacked along K.
    """
    # Gather the 9 tap slices into one contraction operand (flat shifted windows,
    # no in-kernel reshapes).  TODO(synk): audit lane-unaligned offsets (1, R, R+1)
    # in the bundle dump; pltpu.roll on full-width data is the fallback if the
    # per-tap relayouts dominate.
    for kh in range(3):
        for kw in range(3):
            p = (kh % 2) * 2 + (kw % 2)               # which stride-2 phase
            off = (kh // 2) * row_stride + (kw // 2)  # flat shift inside the phase
            tap = kh * 3 + kw
            xk_ref[pl.ds(tap * cin, cin), :] = ph_ref[pl.ds(p * cin, cin),
                                                      pl.ds(off, out_len)]

    # One big-K matmul (K = 9*cin) with f32 accumulation on the MXU.
    acc = jnp.dot(w_ref[...], xk_ref[...], preferred_element_type=jnp.float32)
    acc = acc + b_ref[...]                            # (cout,1) broadcast epilogue

    # Exact (erf) GELU, matching F.gelu's default (approximate='none').
    inv_sqrt2 = 0.7071067811865476
    o_ref[...] = (0.5 * acc * (1.0 + lax.erf(acc * inv_sqrt2))).astype(o_ref.dtype)


# ------------------------------ JAX wrapper -------------------------------- #
def _pick_row_tile(ho, target):
    th = max(1, min(target, ho))
    while ho % th:
        th -= 1
    return th


def downsample_block_forward(x, weight, bias, *, use_bf16=True, row_tile=8):
    """Equivalent of F.gelu(Conv2d(C, 2C, kernel_size=3, stride=2, padding=1)(x)).

    x:      (B, C, H, W)   NCHW, H and W even
    weight: (2C, C, 3, 3)  PyTorch OIHW layout
    bias:   (2C,)
    returns (B, 2C, H//2, W//2) NCHW
    """
    B, C, H, W = x.shape
    Cout = weight.shape[0]
    assert weight.shape == (Cout, C, 3, 3)
    assert H % 2 == 0 and W % 2 == 0, "this kernel assumes even spatial dims"
    Ho, Wo = H // 2, W // 2
    R = Wo + 1
    th = _pick_row_tile(Ho, row_tile)       # output rows per grid step
    nt = Ho // th
    Lt = th * R                             # per-tile flat output length
    Sp = (th + 1) * R + 1                   # per-tile flat phase length (+1 dummy)

    compute_dtype = jnp.bfloat16 if use_bf16 else jnp.float32

    # Pad + space-to-depth into the 4 stride-2 phases, then overlapping row tiles
    # (1-phase-row halo) so every Pallas block is a plain Blocked tile.
    # TODO(synk): this prep is a couple of fused XLA copy passes over the input;
    # moving the phase split in-kernel (pl.ANY + strided DMA) would remove it.
    x_pad = jnp.pad(x, ((0, 0), (0, 0), (1, 1), (1, 1)))            # (B,C,H+2,W+2)
    ph = x_pad.reshape(B, C, Ho + 1, 2, R, 2)
    ph = jnp.transpose(ph, (0, 3, 5, 1, 2, 4)).reshape(B, 4 * C, Ho + 1, R)
    row_idx = np.arange(nt)[:, None] * th + np.arange(th + 1)[None, :]   # (nt, th+1)
    ph = ph[:, :, row_idx, :]                                        # (B,4C,nt,th+1,R)
    ph = jnp.transpose(ph, (0, 2, 1, 3, 4)).reshape(B, nt, 4 * C, (th + 1) * R)
    ph = jnp.pad(ph, ((0, 0), (0, 0), (0, 0), (0, 1)))               # (B,nt,4C,Sp)
    ph = ph.astype(compute_dtype)

    # OIHW -> lane-dense fused weight (Cout, 9*Cin); column = (kh*3+kw)*Cin + ci.
    w_fused = jnp.transpose(weight, (0, 2, 3, 1)).reshape(Cout, 9 * C)
    w_fused = w_fused.astype(compute_dtype)
    b2 = bias.reshape(Cout, 1).astype(jnp.float32)

    kernel = partial(_conv_s2_gelu_kernel, cin=C, row_stride=R, out_len=Lt)

    itemsize = jnp.dtype(compute_dtype).itemsize
    bytes_accessed = (ph.size * itemsize + w_fused.size * itemsize + b2.size * 4
                      + B * nt * Cout * Lt * jnp.dtype(x.dtype).itemsize)

    out4 = pl.pallas_call(
        kernel,
        out_shape=jax.ShapeDtypeStruct((B, nt, Cout, Lt), x.dtype),
        grid_spec=pltpu.PrefetchScalarGridSpec(
            num_scalar_prefetch=0,
            grid=(B, nt),
            in_specs=[
                pl.BlockSpec((None, None, 4 * C, Sp), lambda b, t: (b, t, 0, 0)),
                pl.BlockSpec((Cout, 9 * C), lambda b, t: (0, 0)),
                pl.BlockSpec((Cout, 1), lambda b, t: (0, 0)),
            ],
            out_specs=pl.BlockSpec((None, None, Cout, Lt), lambda b, t: (b, t, 0, 0)),
            scratch_shapes=[pltpu.VMEM((9 * C, Lt), compute_dtype)],
        ),
        compiler_params=pltpu.CompilerParams(
            dimension_semantics=("parallel", "parallel"),
            vmem_limit_bytes=48 * 1024 * 1024,
        ),
        cost_estimate=pl.CostEstimate(
            flops=2 * B * Ho * R * 9 * C * Cout,
            transcendentals=B * Ho * R * Cout,
            bytes_accessed=int(bytes_accessed),
        ),
    )(ph, w_fused, b2)

    # (B, nt, Cout, th*R) -> (B, Cout, Ho, R) -> drop the garbage column -> NCHW.
    # TODO(synk): emit exact Wo-wide rows from the kernel to remove this copy pass.
    out = jnp.transpose(out4, (0, 2, 1, 3)).reshape(B, Cout, Ho, R)[:, :, :, :Wo]
    return out


# ------------------------------ reference ---------------------------------- #
def _reference(x, weight, bias):
    y = lax.conv_general_dilated(
        x, weight, window_strides=(2, 2), padding=((1, 1), (1, 1)),
        dimension_numbers=("NCHW", "OIHW", "NCHW"))
    y = y + bias[None, :, None, None]
    return jax.nn.gelu(y, approximate=False)


# --------------------------------- main ------------------------------------ #
if __name__ == "__main__":
    B, C, H, W = 2, 4, 16, 16          # embedding_channels = 4 (small test shape)
    Cout = 2 * C

    key = jax.random.PRNGKey(0)
    kx, kwt, kb = jax.random.split(key, 3)

    x = jax.random.normal(kx, (B, C, H, W), dtype=jnp.float32)
    fan_in = C * 3 * 3
    bound = 1.0 / math.sqrt(fan_in)
    weight = jax.random.uniform(kwt, (Cout, C, 3, 3), jnp.float32, -bound, bound)
    bias = jax.random.uniform(kb, (Cout,), jnp.float32, -bound, bound)

    y_ref = _reference(x, weight, bias)

    # Default fast path: bf16 activations/weights, f32 accumulation (looser check).
    y_bf16 = jax.jit(downsample_block_forward)(x, weight, bias)
    jax.block_until_ready(y_bf16)
    assert y_bf16.shape == (B, Cout, H // 2, W // 2), y_bf16.shape
    np.testing.assert_allclose(np.asarray(y_bf16), np.asarray(y_ref),
                               atol=3e-2, rtol=3e-2)

    # Full-precision path keeps the tight check against the f32 reference.
    y_f32 = jax.jit(partial(downsample_block_forward, use_bf16=False))(x, weight, bias)
    jax.block_until_ready(y_f32)
    np.testing.assert_allclose(np.asarray(y_f32), np.asarray(y_ref),
                               atol=1e-4, rtol=1e-4)

    print("KERNEL_OK")
</pallas_src>

<mosaic_0001>
module attributes {stable_mosaic.version = 11 : i64} {
  func.func @_conv_s2_gelu_kernel(%arg0: i32, %arg1: i32, %arg2: memref<1x1x16x82xbf16, #tpu.memory_space<vmem>>, %arg3: memref<8x36xbf16, #tpu.memory_space<vmem>>, %arg4: memref<8x1xf32, #tpu.memory_space<vmem>>, %arg5: memref<1x1x8x72xf32, #tpu.memory_space<vmem>>, %arg6: memref<36x72xbf16, #tpu.memory_space<vmem>>) attributes {dimension_semantics = [#tpu.dimension_semantics<parallel>, #tpu.dimension_semantics<parallel>], iteration_bounds = array<i64: 2, 1>, scalar_prefetch = 0 : i64, scratch_operands = 1 : i64, tpu.core_type = #tpu.core_type<tc>, window_params = [{transform_indices = @transform_0, window_bounds = array<i64: 1, 1, 16, 82>}, {pipeline_mode = #tpu.pipeline_mode<synchronous>, transform_indices = @transform_1, window_bounds = array<i64: 8, 36>}, {pipeline_mode = #tpu.pipeline_mode<synchronous>, transform_indices = @transform_2, window_bounds = array<i64: 8, 1>}, {transform_indices = @transform_3, window_bounds = array<i64: 1, 1, 8, 72>}]} {
    %c0 = arith.constant 0 : index
    %c0_0 = arith.constant 0 : index
    %c0_1 = arith.constant 0 : index
    %c0_2 = arith.constant 0 : index
    %0 = vector.load %arg2[%c0, %c0_0, %c0_1, %c0_2] : memref<1x1x16x82xbf16, #tpu.memory_space<vmem>>, vector<1x1x4x72xbf16>
    %1 = vector.shape_cast %0 : vector<1x1x4x72xbf16> to vector<4x72xbf16>
    %c0_3 = arith.constant 0 : index
    %c0_4 = arith.constant 0 : index
    %2 = vector.load %arg6[%c0_3, %c0_4] : memref<36x72xbf16, #tpu.memory_space<vmem>>, vector<4x72xbf16>
    tpu.vector_store %arg6[%c0_3, %c0_4], %1 {strides = array<i32>} : memref<36x72xbf16, #tpu.memory_space<vmem>>, vector<4x72xbf16>,
    %c0_5 = arith.constant 0 : index
    %c0_6 = arith.constant 0 : index
    %c4 = arith.constant 4 : index
    %c0_7 = arith.constant 0 : index
    %3 = vector.load %arg2[%c0_5, %c0_6, %c4, %c0_7] : memref<1x1x16x82xbf16, #tpu.memory_space<vmem>>, vector<1x1x4x72xbf16>
    %4 = vector.shape_cast %3 : vector<1x1x4x72xbf16> to vector<4x72xbf16>
    %c4_8 = arith.constant 4 : index
    %c0_9 = arith.constant 0 : index
    %5 = vector.load %arg6[%c4_8, %c0_9] : memref<36x72xbf16, #tpu.memory_space<vmem>>, vector<4x72xbf16>
    tpu.vector_store %arg6[%c4_8, %c0_9], %4 {strides = array<i32>} : memref<36x72xbf16, #tpu.memory_space<vmem>>, vector<4x72xbf16>,
    %c0_10 = arith.constant 0 : index
    %c0_11 = arith.constant 0 : index
    %c0_12 = arith.constant 0 : index
    %c1 = arith.constant 1 : index
    %6 = vector.load %arg2[%c0_10, %c0_11, %c0_12, %c1] : memref<1x1x16x82xbf16, #tpu.memory_space<vmem>>, vector<1x1x4x72xbf16>
    %7 = vector.shape_cast %6 : vector<1x1x4x72xbf16> to vector<4x72xbf16>
    %c8 = arith.constant 8 : index
    %c0_13 = arith.constant 0 : index
    %8 = vector.load %arg6[%c8, %c0_13] : memref<36x72xbf16, #tpu.memory_space<vmem>>, vector<4x72xbf16>
    tpu.vector_store %arg6[%c8, %c0_13], %7 {strides = array<i32>} : memref<36x72xbf16, #tpu.memory_space<vmem>>, vector<4x72xbf16>,
    %c0_14 = arith.constant 0 : index
    %c0_15 = arith.constant 0 : index
    %c8_16 = arith.constant 8 : index
    %c0_17 = arith.constant 0 : index
    %9 = vector.load %arg2[%c0_14, %c0_15, %c8_16, %c0_17] : memref<1x1x16x82xbf16, #tpu.memory_space<vmem>>, vector<1x1x4x72xbf16>
    %10 = vector.shape_cast %9 : vector<1x1x4x72xbf16> to vector<4x72xbf16>
    %c12 = arith.constant 12 : index
    %c0_18 = arith.constant 0 : index
    %11 = vector.load %arg6[%c12, %c0_18] : memref<36x72xbf16, #tpu.memory_space<vmem>>, vector<4x72xbf16>
    tpu.vector_store %arg6[%c12, %c0_18], %10 {strides = array<i32>} : memref<36x72xbf16, #tpu.memory_space<vmem>>, vector<4x72xbf16>,
    %c0_19 = arith.constant 0 : index
    %c0_20 = arith.constant 0 : index
    %c12_21 = arith.constant 12 : index
    %c0_22 = arith.constant 0 : index
    %12 = vector.load %arg2[%c0_19, %c0_20, %c12_21, %c0_22] : memref<1x1x16x82xbf16, #tpu.memory_space<vmem>>, vector<1x1x4x72xbf16>
    %13 = vector.shape_cast %12 : vector<1x1x4x72xbf16> to vector<4x72xbf16>
    %c16 = arith.constant 16 : index
    %c0_23 = arith.constant 0 : index
    %14 = vector.load %arg6[%c16, %c0_23] : memref<36x72xbf16, #tpu.memory_space<vmem>>, vector<4x72xbf16>
    tpu.vector_store %arg6[%c16, %c0_23], %13 {strides = array<i32>} : memref<36x72xbf16, #tpu.memory_space<vmem>>, vector<4x72xbf16>,
    %c0_24 = arith.constant 0 : index
    %c0_25 = arith.constant 0 : index
    %c8_26 = arith.constant 8 : index
    %c1_27 = arith.constant 1 : index
    %15 = vector.load %arg2[%c0_24, %c0_25, %c8_26, %c1_27] : memref<1x1x16x82xbf16, #tpu.memory_space<vmem>>, vector<1x1x4x72xbf16>
    %16 = vector.shape_cast %15 : vector<1x1x4x72xbf16> to vector<4x72xbf16>
    %c20 = arith.constant 20 : index
    %c0_28 = arith.constant 0 : index
    %17 = vector.load %arg6[%c20, %c0_28] : memref<36x72xbf16, #tpu.memory_space<vmem>>, vector<4x72xbf16>
    tpu.vector_store %arg6[%c20, %c0_28], %16 {strides = array<i32>} : memref<36x72xbf16, #tpu.memory_space<vmem>>, vector<4x72xbf16>,
    %c0_29 = arith.constant 0 : index
    %c0_30 = arith.constant 0 : index
    %c0_31 = arith.constant 0 : index
    %c9 = arith.constant 9 : index
    %18 = vector.load %arg2[%c0_29, %c0_30, %c0_31, %c9] : memref<1x1x16x82xbf16, #tpu.memory_space<vmem>>, vector<1x1x4x72xbf16>
    %19 = vector.shape_cast %18 : vector<1x1x4x72xbf16> to vector<4x72xbf16>
    %c24 = arith.constant 24 : index
    %c0_32 = arith.constant 0 : index
    %20 = vector.load %arg6[%c24, %c0_32] : memref<36x72xbf16, #tpu.memory_space<vmem>>, vector<4x72xbf16>
    tpu.vector_store %arg6[%c24, %c0_32], %19 {strides = array<i32>} : memref<36x72xbf16, #tpu.memory_space<vmem>>, vector<4x72xbf16>,
    %c0_33 = arith.constant 0 : index
    %c0_34 = arith.constant 0 : index
    %c4_35 = arith.constant 4 : index
    %c9_36 = arith.constant 9 : index
    %21 = vector.load %arg2[%c0_33, %c0_34, %c4_35, %c9_36] : memref<1x1x16x82xbf16, #tpu.memory_space<vmem>>, vector<1x1x4x72xbf16>
    %22 = vector.shape_cast %21 : vector<1x1x4x72xbf16> to vector<4x72xbf16>
    %c28 = arith.constant 28 : index
    %c0_37 = arith.constant 0 : index
    %23 = vector.load %arg6[%c28, %c0_37] : memref<36x72xbf16, #tpu.memory_space<vmem>>, vector<4x72xbf16>
    tpu.vector_store %arg6[%c28, %c0_37], %22 {strides = array<i32>} : memref<36x72xbf16, #tpu.memory_space<vmem>>, vector<4x72xbf16>,
    %c0_38 = arith.constant 0 : index
    %c0_39 = arith.constant 0 : index
    %c0_40 = arith.constant 0 : index
    %c10 = arith.constant 10 : index
    %24 = vector.load %arg2[%c0_38, %c0_39, %c0_40, %c10] : memref<1x1x16x82xbf16, #tpu.memory_space<vmem>>, vector<1x1x4x72xbf16>
    %25 = vector.shape_cast %24 : vector<1x1x4x72xbf16> to vector<4x72xbf16>
    %c32 = arith.constant 32 : index
    %c0_41 = arith.constant 0 : index
    %26 = vector.load %arg6[%c32, %c0_41] : memref<36x72xbf16, #tpu.memory_space<vmem>>, vector<4x72xbf16>
    tpu.vector_store %arg6[%c32, %c0_41], %25 {strides = array<i32>} : memref<36x72xbf16, #tpu.memory_space<vmem>>, vector<4x72xbf16>,
    %c0_42 = arith.constant 0 : index
    %c0_43 = arith.constant 0 : index
    %27 = vector.load %arg3[%c0_42, %c0_43] : memref<8x36xbf16, #tpu.memory_space<vmem>>, vector<8x36xbf16>
    %c0_44 = arith.constant 0 : index
    %c0_45 = arith.constant 0 : index
    %28 = vector.load %arg6[%c0_44, %c0_45] : memref<36x72xbf16, #tpu.memory_space<vmem>>, vector<36x72xbf16>
    %cst = arith.constant dense<0.000000e+00> : vector<8x72xf32>
    %29 = tpu.matmul %27, %28, %cst {dimension_numbers = #tpu.dot_dimension_numbers<[1], [0], [0], [1], [0, 0, 1, 1], [], []>} : vector<8x36xbf16>, vector<36x72xbf16>, vector<8x72xf32> -> vector<8x72xf32>
    %c0_46 = arith.constant 0 : index
    %c0_47 = arith.constant 0 : index
    %30 = vector.load %arg4[%c0_46, %c0_47] : memref<8x1xf32, #tpu.memory_space<vmem>>, vector<8x1xf32>
    %31 = vector.broadcast %30 : vector<8x1xf32> to vector<8x72xf32>
    %32 = arith.addf %29, %31 : vector<8x72xf32>
    %cst_48 = arith.constant 5.000000e-01 : f32
    %33 = vector.broadcast %cst_48 : f32 to vector<8x72xf32>
    %34 = arith.mulf %33, %32 : vector<8x72xf32>
    %cst_49 = arith.constant 0.707106769 : f32
    %35 = vector.broadcast %cst_49 : f32 to vector<8x72xf32>
    %36 = arith.mulf %32, %35 : vector<8x72xf32>
    %37 = math.erf %36 : vector<8x72xf32>
    %cst_50 = arith.constant 1.000000e+00 : f32
    %38 = vector.broadcast %cst_50 : f32 to vector<8x72xf32>
    %39 = arith.addf %38, %37 : vector<8x72xf32>
    %40 = arith.mulf %34, %39 : vector<8x72xf32>
    %c0_51 = arith.constant 0 : index
    %c0_52 = arith.constant 0 : index
    %c0_53 = arith.constant 0 : index
    %c0_54 = arith.constant 0 : index
    %41 = vector.load %arg5[%c0_51, %c0_52, %c0_53, %c0_54] : memref<1x1x8x72xf32, #tpu.memory_space<vmem>>, vector<1x1x8x72xf32>
    %42 = vector.shape_cast %41 : vector<1x1x8x72xf32> to vector<8x72xf32>
    %43 = vector.shape_cast %40 : vector<8x72xf32> to vector<1x1x8x72xf32>
    tpu.vector_store %arg5[%c0_51, %c0_52, %c0_53, %c0_54], %43 {strides = array<i32>} : memref<1x1x8x72xf32, #tpu.memory_space<vmem>>, vector<1x1x8x72xf32>,
    return
  }
  func.func @transform_0(%arg0: i32, %arg1: i32) -> (i32, i32, i32, i32) {
    %c0_i32 = arith.constant 0 : i32
    %c0_i32_0 = arith.constant 0 : i32
    %c0_i32_1 = arith.constant 0 : i32
    return %arg0, %arg1, %c0_i32, %c0_i32_0 : i32, i32, i32, i32
  }
  func.func @transform_1(%arg0: i32, %arg1: i32) -> (i32, i32) {
    %c0_i32 = arith.constant 0 : i32
    %c0_i32_0 = arith.constant 0 : i32
    %c0_i32_1 = arith.constant 0 : i32
    return %c0_i32, %c0_i32_0 : i32, i32
  }
  func.func @transform_2(%arg0: i32, %arg1: i32) -> (i32, i32) {
    %c0_i32 = arith.constant 0 : i32
    %c0_i32_0 = arith.constant 0 : i32
    %c0_i32_1 = arith.constant 0 : i32
    return %c0_i32, %c0_i32_0 : i32, i32
  }
  func.func @transform_3(%arg0: i32, %arg1: i32) -> (i32, i32, i32, i32) {
    %c0_i32 = arith.constant 0 : i32
    %c0_i32_0 = arith.constant 0 : i32
    %c0_i32_1 = arith.constant 0 : i32
    return %arg0, %arg1, %c0_i32, %c0_i32_0 : i32, i32, i32, i32
  }
}

</mosaic_0001>

<bundles_post_ra>
// kernel: downsample_block_forward.1
= control target key start
LH: loop header
LB: loop body
LE: loop exit
PB: predicated region body
PF: predicated region fallthrough
CT: control target
= control target key end

     0   :  { %s531_s12 = smov 0   ;;  %s533_s13 = smov 0   ;;  %s586_s0 = inlined_call_operand.vmem [shape: bf16[2,1,16,82], index: 0, kind: input, shape index: {}]   ;;  %s587_s1 = inlined_call_operand.vmem [shape: bf16[8,36], index: 1, kind: input, shape index: {}]   ;;  %s588_s2 = inlined_call_operand.vmem [shape: f32[8,1], index: 2, kind: input, shape index: {}]   ;;  %s589_s3 = inlined_call_operand.vmem [shape: f32[2,1,8,72], index: 3, kind: output, shape index: {}]  }
   0x1   :  { %s535_s14 = smov 0  }
   0x2 LB: > { %s25_s15 = sadd.s32 1, %s499_s13  ;;  %p418_p0 = scmp.ge.s32.totalorder %s503_s14, 1  ;;  %s503_s14 = sphi %s535_s14, %s13_s14   ;;  %s499_s13 = sphi %s533_s13, %s591_s13   ;;  %s495_s12 = sphi %s531_s12, %s590_s12  }
   0x3   : > { %p27_p1 = scmp.ge.s32.totalorder %s25_s15, 2  ;;  %p157_p2 = scmp.lt.s32.totalorder %s503_s14, 3 }
   0x5   : > { %s593_s15 = smov (%p27_p1, %s25_s15), 0  ;;  %p158_p3 = pnand %p418_p0, %p157_p2 }
   0x6   : > { %p187_p4 = scmp.lt.s32.totalorder (!%p158_p3), %s495_s12, 1  ;;  %s506_s20 = smov (!%p158_p3), 118  }
   0x7   : > { %161 = sbr.rel (%p158_p3) target bundleno = 367 (0x16f), region = 32  ;;  %s507_s21 = smov (!%p158_p3), 119  }
   0x8   : > { %s508_s22 = smov (!%p158_p3), 127  }
   0xc   : > { %s595_s12 = smov (!%p187_p4, %s495_s12), 1  ;;  %v505_v0 = vmov 0.0   ;;  %vm205_vm0 = vcmask 582656   ;;  %vm208_vm1 = vcmask 584706   ;;  %vm509_vm2 = vmmov 0   ;;  %v258_v13 = vld [vmem:[%s588_s2] sm:$0xff] }
   0xd   : > { %434 = vmatprep.subr.bf16.mxu0 %v505_v0  ;;  %s429_s16 = sshll.u32 %s595_s12, 3  ;;  %440 = vmatprep.mubr.msk.bf16.mxu0 %vm509_vm2, %v505_v0  ;;  %v510_v14 = vmov 0   ;;  %vm283_vm3 = vcmask 1041408   ;;  %v252_v24 = vld [vmem:[%s587_s1] sm:$0xf]  ;;  %vm279_vm4 = vcmask 293888  }
   0xe   : > { %s195_s19 = scalar_lea.vmem %s586_s0, %s429_s16  ;;  %474 = vset.pattern.permute.xlu1 %v510_v14  ;;  %475 = vset.pattern.permute.xlu0 %v510_v14  ;;  %s202_s29 = scalar_lea.vmem %s589_s3, %s429_s16  ;;  %vm332_vm5 = vcmask 588800  }
   0xf   : > { %v246_v1 = vld [vmem:[%s195_s19] sm:$0x3]  ;;  %v240_v3 = vld [vmem:[%s195_s19] sm:$0xc]  ;;  %v227_v4 = vld [vmem:[%s195_s19 + $0x4] sm:$0x3] }
  0x10   : > { %v234_v2 = vld [vmem:[%s195_s19] sm:$0x3]  ;;  %248 = vrot.lane.b32.xlu0 %v246_v1, %s506_s20  ;;  %v229_v5 = vrot.slane %v227_v4, 6  ;;  %v221_v7 = vld [vmem:[%s195_s19 + $0x4] sm:$0xc] }
  0x11   : > { %236 = vrot.lane.b32.xlu1 %v234_v2, %s507_s21  ;;  %v204_v6 = vld [vmem:[%s195_s19] sm:$0x3]  ;;  %v422_v8 = vrot.slane %v221_v7, 10  ;;  %v207_v9 = vld [vmem:[%s195_s19] sm:$0xc] }
  0x12   : > { %206 = vst.msk [vmem:[#allocation2] sm:$0x3] %vm205_vm0, %v204_v6  ;;  %v216_v10 = vld [vmem:[%s195_s19 + $0x4] sm:$0x3]  ;;  %v210_v12 = vld [vmem:[%s195_s19] sm:$0x3] }
  0x13   : > { %209 = vst.msk [vmem:[#allocation2] sm:$0xc] %vm208_vm1, %v207_v9  ;;  %v218_v11 = vrot.slane %v216_v10, 6 }
  0x14   : > { %230 = vrot.lane.b32.xlu0 %v229_v5, %s508_s22  ;;  %226 = vst.msk [vmem:[#allocation2 + $0x8] sm:$0x3] %vm205_vm0, %v422_v8 }
  0x15   : > { %242 = vrot.lane.b32.xlu1 %v240_v3, %s507_s21  ;;  %220 = vst.msk [vmem:[#allocation2 + $0x4] sm:$0xc] %vm208_vm1, %v218_v11 }
  0x18   : > { %212 = vrot.lane.b32.xlu0 %v210_v12, %s508_s22 }
  0x19   : > { %261 = vperm.xlu1 %474, %v258_v13  }
  0x82   : > { %v249_v15 = vpop.permute.xlu0 %248 }
  0x83   : > { %v237_v16 = vpop.permute.xlu1 %236  ;;  %251 = vst.msk [vmem:[#allocation2 + $0x10] sm:$0x3] %vm205_vm0, %v249_v15 }
  0x84   : > { %239 = vst.msk [vmem:[#allocation2 + $0xc] sm:$0x3] %vm205_vm0, %v237_v16 }
  0x86   : > { %v231_v18 = vpop.permute.xlu0 %230 }
  0x87   : > { %v243_v17 = vpop.permute.xlu1 %242  ;;  %233 = vst.msk [vmem:[#allocation2 + $0x8] sm:$0xc] %vm208_vm1, %v231_v18 }
  0x88   : > { %245 = vst.msk [vmem:[#allocation2 + $0xc] sm:$0xc] %vm208_vm1, %v243_v17 }
  0x8a   : > { %v213_v19 = vpop.permute.xlu0 %212  ;;  %v476_v20 = vld [vmem:[#allocation2 + $0x10] ss:$0 sps:$4 sm:$0x33]  }
  0x8b   : > { %215 = vst.msk [vmem:[#allocation2 + $0x4] sm:$0x3] %vm205_vm0, %v213_v19  ;;  %v285_v21 = vsel %vm283_vm3, %v476_v20, 0 }
  0x8c   : > { %435 = vmatpush3.bf16.msra.mxu0 %v285_v21 }
  0x8d   : > { %436 = vmatprep.subr.bf16.mxu0 %v505_v0 }
  0x8f   : > { %v477_v22 = vld [vmem:[#allocation2 + $0x8] sm:$0xff]  }
  0x90   : > { %437 = vmatpush3.bf16.msra.mxu0 %v477_v22 }
  0x91   : > { %438 = vmatprep.subr.bf16.mxu0 %v505_v0 }
  0x92   : > { %v478_v23 = vld [vmem:[#allocation2] sm:$0xff]  }
  0x94   : > { %439 = vmatpush3.bf16.msra.mxu0 %v478_v23  ;;  %v262_v25 = vpop.permute.xlu1 %261 }
  0x97   : > { %441 = vmatmul.mubr.msk.bf16.vlgmr.msra.gmra.mxu0 %vm279_vm4, %v252_v24 }
 0x157   : > { %v321_v26 = vpop.f32.mrf.mxu0 }
 0x158   : > { %v322_v27 = vadd.f32 %v321_v26, %v262_v25 }
 0x159   : > { %v442_v28 = vpop.f32.mrf.mxu0 }
 0x15a   : > { %v328_v29 = vmul.f32 0.70710677, %v322_v27  ;;  %v327_v33 = vmul.f32 0.5, %v322_v27 }
 0x15b   : > { %v324_v30 = vpop.f32.mrf.mxu0 }
 0x15c   : > { %479 = verf.f32 %v328_v29 }
 0x15d   : > { %v443_v31 = vpop.f32.mrf.mxu0 }
 0x169   : > { %v480_v32 = vpop.eup %479 }
 0x16a   : > { %v330_v34 = vadd.f32 1.0, %v480_v32 }
 0x16c   : > { %v331_v35 = vmul.f32 %v330_v34, %v327_v33 }
 0x16e   : > { %333 = vst.msk [vmem:[%s202_s29] sm:$0xff] %vm332_vm5, %v331_v35 }
 0x16f PF: > { %s13_s14 = sadd.s32 1, %s503_s14   ;;  %s590_s12 = smov %s499_s13 }
 0x170   : > { %p10_p5 = scmp.ge.s32.totalorder %s13_s14, 4   ;;  %s591_s13 = smov %s593_s15 }
 0x172   :  { %12 = sbr.rel (!%p10_p5) target bundleno = 2 (0x2), region = 62 }

</bundles_post_ra>
